<compile_context>
chip_gen: v6e
topology: v6e:2x2x1
jax: 0.10.0
libtpu: 0.0.40
codegen_flags: <defaults>
</compile_context>

<pallas_src>
import numpy as np
import jax
import jax.numpy as jnp
from jax import lax
from jax.experimental import pallas as pl
from jax.experimental.pallas import tpu as pltpu


def _round_up(a, b):
    return (a + b - 1) // b * b


def _make_idl_kernel(max_num_sources, scale, known_num):
    inv_scale = np.float32(1.0 / scale)

    def kernel(x_ref, t_ref, cand_ref, ss_ref, doa_ref, vad_ref):
        # x_ref:   (tR, D)  flattened pred_ipd rows (one row per (b, t) frame)
        # t_ref:   (G, D)   flattened dpipd_template, resident across the grid
        # cand_ref:(2, G)   row 0 = ele candidate per map cell, row 1 = azi
        x = x_ref[...]
        t = t_ref[...]
        cand = cand_ref[...]
        ele_row = cand[0:1, :]                       # (1, G)
        azi_row = cand[1:2, :]                       # (1, G)
        G = t.shape[0]
        iota_g = lax.broadcasted_iota(jnp.int32, (1, G), 1)

        ele_cols = []
        azi_cols = []
        vad_cols = []
        for s in range(max_num_sources):
            # Similarity map on the MXU: contract the feature (D) axis.
            scores = lax.dot_general(
                x, t, (((1,), (1,)), ((), ())),
                preferred_element_type=jnp.float32) * inv_scale   # (tR, G)
            if s == 0:
                ss_ref[...] = scores                 # pred_ss (first pass only)

            # argmax over the map (first max index on ties, like torch.argmax)
            m = jnp.max(scores, axis=-1, keepdims=True)           # (tR, 1)
            is_max = scores >= m
            idx = jnp.min(jnp.where(is_max, iota_g, G),
                          axis=-1, keepdims=True)                 # (tR, 1)
            onehot = (iota_g == idx).astype(jnp.float32)          # (tR, G)

            # Gather winning template rows as a one-hot matmul (MXU, no gather)
            tmpl = lax.dot_general(
                onehot, t, (((1,), (0,)), ((), ())),
                preferred_element_type=jnp.float32)               # (tR, D)

            num = jnp.sum(x * tmpl, axis=-1, keepdims=True)       # (tR, 1)
            den = jnp.sum(tmpl * tmpl, axis=-1, keepdims=True)    # (tR, 1)
            ratio = num / den

            ele_cols.append(jnp.sum(onehot * ele_row, axis=-1, keepdims=True))
            azi_cols.append(jnp.sum(onehot * azi_row, axis=-1, keepdims=True))
            vad_cols.append(jnp.ones_like(ratio) if known_num else ratio)

            # Iterative deflation of the predicted IPD.
            x = x - ratio * tmpl

        # (tR, 2*S) laid out as [ele_s0..ele_sS-1, azi_s0..azi_sS-1]
        doa_ref[...] = jnp.concatenate(ele_cols + azi_cols, axis=-1)
        vad_ref[...] = jnp.concatenate(vad_cols, axis=-1)

    return kernel


def source_detect_localize(pred_ipd, dpipd_template, ele_candidate,
                           azi_candidate, max_num_sources,
                           source_num_mode="unkNum"):
    """IDL-mode forward of SourceDetectLocalize.

    pred_ipd:        (nb, nt, 2nf, nmic_pair) float32
    dpipd_template:  (nele, nazi, 2nf, nmic_pair) float32
    returns (pred_DOAs (nb,nt,2,S), pred_VADs (nb,nt,S), pred_ss (nb,nt,nele,nazi))
    """
    nb, nt, nf2, nmic = pred_ipd.shape
    nele, nazi, _, _ = dpipd_template.shape
    D = nf2 * nmic
    G = nele * nazi
    S = max_num_sources
    scale = nmic * nf2 / 2.0

    x = jnp.asarray(pred_ipd, jnp.float32).reshape(nb * nt, D)
    t = jnp.asarray(dpipd_template, jnp.float32).reshape(G, D)

    # Per-map-cell DOA candidate values (row-major over (nele, nazi)).
    ele_of_g = np.repeat(np.asarray(ele_candidate, np.float32), nazi)
    azi_of_g = np.tile(np.asarray(azi_candidate, np.float32), nele)
    cand = jnp.asarray(np.stack([ele_of_g, azi_of_g], axis=0))    # (2, G)

    # Row tiling: 128 rows/step at scale, small multiples of 8 otherwise so the
    # toy case still exercises a multi-step, pipelined grid.
    R = nb * nt
    tR = 128 if R >= 128 else 8
    R_pad = _round_up(R, tR)
    if R_pad != R:
        x = jnp.pad(x, ((0, R_pad - R), (0, 0)))

    kernel = _make_idl_kernel(S, scale, source_num_mode == "kNum")

    ss, doa, vad = pl.pallas_call(
        kernel,
        out_shape=(
            jax.ShapeDtypeStruct((R_pad, G), jnp.float32),
            jax.ShapeDtypeStruct((R_pad, 2 * S), jnp.float32),
            jax.ShapeDtypeStruct((R_pad, S), jnp.float32),
        ),
        grid=(R_pad // tR,),
        in_specs=[
            pl.BlockSpec((tR, D), lambda r: (r, 0)),
            # Template + candidate tables: block index constant in r -> DMA'd
            # once, held resident in VMEM across the whole row loop.
            pl.BlockSpec((G, D), lambda r: (0, 0)),
            pl.BlockSpec((2, G), lambda r: (0, 0)),
        ],
        out_specs=(
            pl.BlockSpec((tR, G), lambda r: (r, 0)),
            pl.BlockSpec((tR, 2 * S), lambda r: (r, 0)),
            pl.BlockSpec((tR, S), lambda r: (r, 0)),
        ),
        compiler_params=pltpu.CompilerParams(
            dimension_semantics=("parallel",),
        ),
    )(x, t, cand)

    pred_ss = ss[:R].reshape(nb, nt, nele, nazi)
    pred_DOAs = doa[:R].reshape(nb, nt, 2, S)
    pred_VADs = vad[:R].reshape(nb, nt, S)
    return pred_DOAs, pred_VADs, pred_ss


def _reference(pred_ipd, templ, ele_cand, azi_cand, S, mode):
    """Pure-numpy reference matching the PyTorch IDL path."""
    pred_ipd = np.asarray(pred_ipd, np.float64)
    templ = np.asarray(templ, np.float64)
    nb, nt, nf2, nmic = pred_ipd.shape
    nele, nazi = templ.shape[:2]
    scale = nmic * nf2 / 2.0
    x = pred_ipd.reshape(nb, nt, -1).copy()
    tflat = templ.reshape(nele * nazi, -1)
    pred_ss = (x @ tflat.T) / scale
    doas = np.zeros((nb, nt, 2, S), np.float64)
    vads = np.zeros((nb, nt, S), np.float64)
    for s in range(S):
        m = (x @ tflat.T) / scale
        g = np.argmax(m, axis=-1)
        e_idx, a_idx = np.unravel_index(g, (nele, nazi))
        doas[:, :, 0, s] = np.asarray(ele_cand)[e_idx]
        doas[:, :, 1, s] = np.asarray(azi_cand)[a_idx]
        tm = tflat[g]
        ratio = np.sum(tm * x, -1) / np.sum(tm * tm, -1)
        vads[:, :, s] = 1.0 if mode == "kNum" else 0.0
        if mode == "kNum":
            vads[:, :, s] = 1.0
        else:
            vads[:, :, s] = ratio
        x = x - ratio[..., None] * tm
    return doas, vads, pred_ss.reshape(nb, nt, nele, nazi)


if __name__ == "__main__":
    # Small deterministic config consistent with the module's forward:
    nb, nt = 2, 8            # batch, time frames
    nf2, nmic = 16, 4        # 2*nf (cos/sin stacked), mic pairs
    nele, nazi = 8, 16       # elevation / azimuth grid  (G = 128, lane-dense)
    max_num_sources = 2

    key = jax.random.PRNGKey(0)
    k1, k2 = jax.random.split(key)
    pred_ipd = jax.random.normal(k1, (nb, nt, nf2, nmic), dtype=jnp.float32)
    dpipd_template = jax.random.normal(k2, (nele, nazi, nf2, nmic),
                                       dtype=jnp.float32)
    ele_candidate = np.linspace(0.0, 90.0, nele).astype(np.float32)
    azi_candidate = np.linspace(-180.0, 180.0, nazi,
                                endpoint=False).astype(np.float32)

    doas, vads, ss = source_detect_localize(
        pred_ipd, dpipd_template, ele_candidate, azi_candidate,
        max_num_sources, source_num_mode="unkNum")
    doas, vads, ss = jax.block_until_ready((doas, vads, ss))

    assert ss.shape == (nb, nt, nele, nazi)
    assert doas.shape == (nb, nt, 2, max_num_sources)
    assert vads.shape == (nb, nt, max_num_sources)

    ref_doas, ref_vads, ref_ss = _reference(
        np.asarray(pred_ipd), np.asarray(dpipd_template),
        ele_candidate, azi_candidate, max_num_sources, "unkNum")
    np.testing.assert_allclose(np.asarray(ss), ref_ss, rtol=1e-3, atol=1e-3)
    np.testing.assert_allclose(np.asarray(doas), ref_doas, rtol=1e-4, atol=1e-4)
    np.testing.assert_allclose(np.asarray(vads), ref_vads, rtol=1e-3, atol=1e-3)

    print("KERNEL_OK")
</pallas_src>

<mosaic_0001>
module attributes {stable_mosaic.version = 11 : i64} {
  func.func @kernel(%arg0: i32, %arg1: memref<8x64xf32, #tpu.memory_space<vmem>>, %arg2: memref<128x64xf32, #tpu.memory_space<vmem>>, %arg3: memref<2x128xf32, #tpu.memory_space<vmem>>, %arg4: memref<8x128xf32, #tpu.memory_space<vmem>>, %arg5: memref<8x4xf32, #tpu.memory_space<vmem>>, %arg6: memref<8x2xf32, #tpu.memory_space<vmem>>) attributes {dimension_semantics = [#tpu.dimension_semantics<parallel>], iteration_bounds = array<i64: 2>, scalar_prefetch = 0 : i64, scratch_operands = 0 : i64, tpu.core_type = #tpu.core_type<tc>, window_params = [{transform_indices = @transform_0, window_bounds = array<i64: 8, 64>}, {pipeline_mode = #tpu.pipeline_mode<synchronous>, transform_indices = @transform_1, window_bounds = array<i64: 128, 64>}, {pipeline_mode = #tpu.pipeline_mode<synchronous>, transform_indices = @transform_2, window_bounds = array<i64: 2, 128>}, {transform_indices = @transform_3, window_bounds = array<i64: 8, 128>}, {transform_indices = @transform_4, window_bounds = array<i64: 8, 4>}, {transform_indices = @transform_5, window_bounds = array<i64: 8, 2>}]} {
    %c0 = arith.constant 0 : index
    %c0_0 = arith.constant 0 : index
    %0 = vector.load %arg1[%c0, %c0_0] : memref<8x64xf32, #tpu.memory_space<vmem>>, vector<8x64xf32>
    %c0_1 = arith.constant 0 : index
    %c0_2 = arith.constant 0 : index
    %1 = vector.load %arg2[%c0_1, %c0_2] : memref<128x64xf32, #tpu.memory_space<vmem>>, vector<128x64xf32>
    %c0_3 = arith.constant 0 : index
    %c0_4 = arith.constant 0 : index
    %2 = vector.load %arg3[%c0_3, %c0_4] : memref<2x128xf32, #tpu.memory_space<vmem>>, vector<2x128xf32>
    %3 = vector.extract_strided_slice %2 {offsets = [0, 0], sizes = [1, 128], strides = [1, 1]} : vector<2x128xf32> to vector<1x128xf32>
    %4 = vector.extract_strided_slice %2 {offsets = [1, 0], sizes = [1, 128], strides = [1, 1]} : vector<2x128xf32> to vector<1x128xf32>
    %5 = tpu.iota {dimensions = array<i32: 1>} : vector<1x128xi32>
    %cst = arith.constant dense<0.000000e+00> : vector<8x128xf32>
    %6 = tpu.matmul %0, %1, %cst {dimension_numbers = #tpu.dot_dimension_numbers<[1], [1], [0], [0], [0, 0, 1, 0], [], []>} : vector<8x64xf32>, vector<128x64xf32>, vector<8x128xf32> -> vector<8x128xf32>
    %cst_5 = arith.constant 3.125000e-02 : f32
    %7 = vector.broadcast %cst_5 : f32 to vector<8x128xf32>
    %8 = arith.mulf %6, %7 : vector<8x128xf32>
    %c0_6 = arith.constant 0 : index
    %c0_7 = arith.constant 0 : index
    %9 = vector.load %arg4[%c0_6, %c0_7] : memref<8x128xf32, #tpu.memory_space<vmem>>, vector<8x128xf32>
    tpu.vector_store %arg4[%c0_6, %c0_7], %8 {strides = array<i32>} : memref<8x128xf32, #tpu.memory_space<vmem>>, vector<8x128xf32>,
    %cst_8 = arith.constant dense<0xFF800000> : vector<8xf32>
    %10 = vector.multi_reduction <maximumf>, %8, %cst_8 [1] : vector<8x128xf32> to vector<8xf32>
    %11 = vector.shape_cast %10 : vector<8xf32> to vector<8x1xf32>
    %12 = vector.broadcast %11 : vector<8x1xf32> to vector<8x128xf32>
    %13 = arith.cmpf oge, %8, %12 : vector<8x128xf32>
    %c128_i32 = arith.constant 128 : i32
    %14 = vector.shape_cast %5 : vector<1x128xi32> to vector<1x128xi32>
    %15 = vector.broadcast %14 : vector<1x128xi32> to vector<8x128xi32>
    %16 = vector.broadcast %c128_i32 : i32 to vector<8x128xi32>
    %17 = arith.select %13, %15, %16 : vector<8x128xi1>, vector<8x128xi32>
    %cst_9 = arith.constant dense<2147483647> : vector<8xi32>
    %18 = vector.multi_reduction <minsi>, %17, %cst_9 [1] : vector<8x128xi32> to vector<8xi32>
    %19 = vector.shape_cast %18 : vector<8xi32> to vector<8x1xi32>
    %20 = vector.broadcast %5 : vector<1x128xi32> to vector<8x128xi32>
    %21 = vector.broadcast %19 : vector<8x1xi32> to vector<8x128xi32>
    %22 = arith.cmpi eq, %20, %21 : vector<8x128xi32>
    %23 = arith.extui %22 : vector<8x128xi1> to vector<8x128xi32>
    %24 = arith.sitofp %23 : vector<8x128xi32> to vector<8x128xf32>
    %cst_10 = arith.constant dense<0.000000e+00> : vector<8x64xf32>
    %25 = tpu.matmul %24, %1, %cst_10 {dimension_numbers = #tpu.dot_dimension_numbers<[1], [0], [0], [1], [0, 0, 1, 1], [], []>} : vector<8x128xf32>, vector<128x64xf32>, vector<8x64xf32> -> vector<8x64xf32>
    %26 = arith.mulf %0, %25 : vector<8x64xf32>
    %cst_11 = arith.constant dense<0.000000e+00> : vector<8xf32>
    %27 = vector.multi_reduction <add>, %26, %cst_11 [1] : vector<8x64xf32> to vector<8xf32>
    %28 = vector.shape_cast %27 : vector<8xf32> to vector<8x1xf32>
    %29 = arith.mulf %25, %25 : vector<8x64xf32>
    %cst_12 = arith.constant dense<0.000000e+00> : vector<8xf32>
    %30 = vector.multi_reduction <add>, %29, %cst_12 [1] : vector<8x64xf32> to vector<8xf32>
    %31 = vector.shape_cast %30 : vector<8xf32> to vector<8x1xf32>
    %32 = arith.divf %28, %31 : vector<8x1xf32>
    %33 = vector.broadcast %3 : vector<1x128xf32> to vector<8x128xf32>
    %34 = arith.mulf %24, %33 : vector<8x128xf32>
    %cst_13 = arith.constant dense<0.000000e+00> : vector<8xf32>
    %35 = vector.multi_reduction <add>, %34, %cst_13 [1] : vector<8x128xf32> to vector<8xf32>
    %36 = vector.shape_cast %35 : vector<8xf32> to vector<8x1xf32>
    %37 = vector.broadcast %4 : vector<1x128xf32> to vector<8x128xf32>
    %38 = arith.mulf %24, %37 : vector<8x128xf32>
    %cst_14 = arith.constant dense<0.000000e+00> : vector<8xf32>
    %39 = vector.multi_reduction <add>, %38, %cst_14 [1] : vector<8x128xf32> to vector<8xf32>
    %40 = vector.shape_cast %39 : vector<8xf32> to vector<8x1xf32>
    %41 = vector.broadcast %32 : vector<8x1xf32> to vector<8x64xf32>
    %42 = arith.mulf %41, %25 : vector<8x64xf32>
    %43 = arith.subf %0, %42 : vector<8x64xf32>
    %cst_15 = arith.constant dense<0.000000e+00> : vector<8x128xf32>
    %44 = tpu.matmul %43, %1, %cst_15 {dimension_numbers = #tpu.dot_dimension_numbers<[1], [1], [0], [0], [0, 0, 1, 0], [], []>} : vector<8x64xf32>, vector<128x64xf32>, vector<8x128xf32> -> vector<8x128xf32>
    %cst_16 = arith.constant 3.125000e-02 : f32
    %45 = vector.broadcast %cst_16 : f32 to vector<8x128xf32>
    %46 = arith.mulf %44, %45 : vector<8x128xf32>
    %cst_17 = arith.constant dense<0xFF800000> : vector<8xf32>
    %47 = vector.multi_reduction <maximumf>, %46, %cst_17 [1] : vector<8x128xf32> to vector<8xf32>
    %48 = vector.shape_cast %47 : vector<8xf32> to vector<8x1xf32>
    %49 = vector.broadcast %48 : vector<8x1xf32> to vector<8x128xf32>
    %50 = arith.cmpf oge, %46, %49 : vector<8x128xf32>
    %c128_i32_18 = arith.constant 128 : i32
    %51 = vector.shape_cast %5 : vector<1x128xi32> to vector<1x128xi32>
    %52 = vector.broadcast %51 : vector<1x128xi32> to vector<8x128xi32>
    %53 = vector.broadcast %c128_i32_18 : i32 to vector<8x128xi32>
    %54 = arith.select %50, %52, %53 : vector<8x128xi1>, vector<8x128xi32>
    %cst_19 = arith.constant dense<2147483647> : vector<8xi32>
    %55 = vector.multi_reduction <minsi>, %54, %cst_19 [1] : vector<8x128xi32> to vector<8xi32>
    %56 = vector.shape_cast %55 : vector<8xi32> to vector<8x1xi32>
    %57 = vector.broadcast %5 : vector<1x128xi32> to vector<8x128xi32>
    %58 = vector.broadcast %56 : vector<8x1xi32> to vector<8x128xi32>
    %59 = arith.cmpi eq, %57, %58 : vector<8x128xi32>
    %60 = arith.extui %59 : vector<8x128xi1> to vector<8x128xi32>
    %61 = arith.sitofp %60 : vector<8x128xi32> to vector<8x128xf32>
    %cst_20 = arith.constant dense<0.000000e+00> : vector<8x64xf32>
    %62 = tpu.matmul %61, %1, %cst_20 {dimension_numbers = #tpu.dot_dimension_numbers<[1], [0], [0], [1], [0, 0, 1, 1], [], []>} : vector<8x128xf32>, vector<128x64xf32>, vector<8x64xf32> -> vector<8x64xf32>
    %63 = arith.mulf %43, %62 : vector<8x64xf32>
    %cst_21 = arith.constant dense<0.000000e+00> : vector<8xf32>
    %64 = vector.multi_reduction <add>, %63, %cst_21 [1] : vector<8x64xf32> to vector<8xf32>
    %65 = vector.shape_cast %64 : vector<8xf32> to vector<8x1xf32>
    %66 = arith.mulf %62, %62 : vector<8x64xf32>
    %cst_22 = arith.constant dense<0.000000e+00> : vector<8xf32>
    %67 = vector.multi_reduction <add>, %66, %cst_22 [1] : vector<8x64xf32> to vector<8xf32>
    %68 = vector.shape_cast %67 : vector<8xf32> to vector<8x1xf32>
    %69 = arith.divf %65, %68 : vector<8x1xf32>
    %70 = vector.broadcast %3 : vector<1x128xf32> to vector<8x128xf32>
    %71 = arith.mulf %61, %70 : vector<8x128xf32>
    %cst_23 = arith.constant dense<0.000000e+00> : vector<8xf32>
    %72 = vector.multi_reduction <add>, %71, %cst_23 [1] : vector<8x128xf32> to vector<8xf32>
    %73 = vector.shape_cast %72 : vector<8xf32> to vector<8x1xf32>
    %74 = vector.broadcast %4 : vector<1x128xf32> to vector<8x128xf32>
    %75 = arith.mulf %61, %74 : vector<8x128xf32>
    %cst_24 = arith.constant dense<0.000000e+00> : vector<8xf32>
    %76 = vector.multi_reduction <add>, %75, %cst_24 [1] : vector<8x128xf32> to vector<8xf32>
    %77 = vector.shape_cast %76 : vector<8xf32> to vector<8x1xf32>
    %78 = tpu.concatenate %36, %73, %40, %77 in 1 : vector<8x1xf32>, vector<8x1xf32>, vector<8x1xf32>, vector<8x1xf32> -> vector<8x4xf32>
    %c0_25 = arith.constant 0 : index
    %c0_26 = arith.constant 0 : index
    %79 = vector.load %arg5[%c0_25, %c0_26] : memref<8x4xf32, #tpu.memory_space<vmem>>, vector<8x4xf32>
    tpu.vector_store %arg5[%c0_25, %c0_26], %78 {strides = array<i32>} : memref<8x4xf32, #tpu.memory_space<vmem>>, vector<8x4xf32>,
    %80 = tpu.concatenate %32, %69 in 1 : vector<8x1xf32>, vector<8x1xf32> -> vector<8x2xf32>
    %c0_27 = arith.constant 0 : index
    %c0_28 = arith.constant 0 : index
    %81 = vector.load %arg6[%c0_27, %c0_28] : memref<8x2xf32, #tpu.memory_space<vmem>>, vector<8x2xf32>
    tpu.vector_store %arg6[%c0_27, %c0_28], %80 {strides = array<i32>} : memref<8x2xf32, #tpu.memory_space<vmem>>, vector<8x2xf32>,
    return
  }
  func.func @transform_0(%arg0: i32) -> (i32, i32) {
    %c0_i32 = arith.constant 0 : i32
    %c0_i32_0 = arith.constant 0 : i32
    return %arg0, %c0_i32 : i32, i32
  }
  func.func @transform_1(%arg0: i32) -> (i32, i32) {
    %c0_i32 = arith.constant 0 : i32
    %c0_i32_0 = arith.constant 0 : i32
    %c0_i32_1 = arith.constant 0 : i32
    return %c0_i32, %c0_i32_0 : i32, i32
  }
  func.func @transform_2(%arg0: i32) -> (i32, i32) {
    %c0_i32 = arith.constant 0 : i32
    %c0_i32_0 = arith.constant 0 : i32
    %c0_i32_1 = arith.constant 0 : i32
    return %c0_i32, %c0_i32_0 : i32, i32
  }
  func.func @transform_3(%arg0: i32) -> (i32, i32) {
    %c0_i32 = arith.constant 0 : i32
    %c0_i32_0 = arith.constant 0 : i32
    return %arg0, %c0_i32 : i32, i32
  }
  func.func @transform_4(%arg0: i32) -> (i32, i32) {
    %c0_i32 = arith.constant 0 : i32
    %c0_i32_0 = arith.constant 0 : i32
    return %arg0, %c0_i32 : i32, i32
  }
  func.func @transform_5(%arg0: i32) -> (i32, i32) {
    %c0_i32 = arith.constant 0 : i32
    %c0_i32_0 = arith.constant 0 : i32
    return %arg0, %c0_i32 : i32, i32
  }
}

</mosaic_0001>

<bundles_post_ra>
// kernel: tpu_custom_call.1
= control target key start
LH: loop header
LB: loop body
LE: loop exit
PB: predicated region body
PF: predicated region fallthrough
CT: control target
= control target key end

     0   :  { %11 = vsyncpa [#allocation3], 0  ;;  %s1634_s0 = inlined_call_operand.vmem [shape: f32[16,64], index: 0, kind: input, shape index: {}]   ;;  %s1635_s1 = inlined_call_operand.vmem [shape: f32[128,64], index: 1, kind: input, shape index: {}]   ;;  %s1636_s2 = inlined_call_operand.vmem [shape: f32[2,128], index: 2, kind: input, shape index: {}]   ;;  %s1637_s3 = inlined_call_operand.hbm [shape: f32[16,128], index: 3, kind: output, shape index: {0}]   ;;  %s1638_s4 = inlined_call_operand.vmem [shape: f32[16,4], index: 4, kind: output, shape index: {1}]   ;;  %s1639_s5 = inlined_call_operand.vmem [shape: f32[16,2], index: 5, kind: output, shape index: {2}]  }
   0x1   :  { %13 = vsyncpa [#allocation3 + $0x1], 0  ;;  %s1228_s18 = smov 0   ;;  %s1230_s19 = smov 0  }
   0x2   :  { %s1232_s20 = smov 0   ;;  %s1234_s21 = smov 0  }
   0x3 LB: > { %s1249_s22 = sadd.s32 4294967295, %s1192_s21   ;;  %s828_s23 = sadd.s32 4294967294, %s1192_s21   ;;  %s1192_s21 = sphi %s1234_s21, %s1645_s21   ;;  %s1188_s20 = sphi %s1232_s20, %s1644_s20   ;;  %s1184_s19 = sphi %s1230_s19, %s1643_s19   ;;  %s1180_s18 = sphi %s1228_s18, %s1642_s18  }
   0x4   : > { %s1253_s24 = sadd.s32 1, %s1192_s21   ;;  %s94_s25 = sadd.s32 1, %s1188_s20 }
   0x5   : > { %s91_s26 = ssub.s32 %s1192_s21, %s1253_s24  ;;  %p104_p0 = scmp.ne.s32.totalorder %s1188_s20, %s1184_s19 }
   0x6   : > { %p92_p1 = scmp.eq.s32.totalorder %s91_s26, 0  ;;  %p105_p2 = scmp.eq.s32.totalorder %s1249_s22, 1 }
   0x7   : > { %p110_p3 = scmp.ne.s32.totalorder %s1184_s19, %s1180_s18  ;;  %p111_p4 = scmp.eq.s32.totalorder %s828_s23, 1 }
   0x8   : > { %s1264_s27 = scalar_select %p92_p1, %s1188_s20, %s94_s25  }
   0x9   : > { %p1266_p5 = por %p105_p2, %p104_p0  ;;  %p1270_p6 = por %p111_p4, %p110_p3 }
   0xa   : > { %p831_p7 = scmp.ge.s32.totalorder %s1192_s21, 1  ;;  %p194_p8 = scmp.lt.s32.totalorder %s1192_s21, 3 }
   0xc   : > { %p195_p9 = pnand %p831_p7, %p194_p8 }
   0xd   : > { %p229_p10 = scmp.lt.s32.totalorder (!%p195_p9), %s1249_s22, 1  ;;  %s214_s10 = sand.u32 (!%p195_p9), 1, %s1184_s19  }
   0xe   : > { %198 = sbr.rel (%p195_p9) target bundleno = 2034 (0x7f2), region = 32  ;;  %s1490_s11 = sshll.u32 (!%p195_p9), %s214_s10, 3 }
   0xf   : > { %s216_s12 = scalar_lea.vmem (!%p195_p9), [#allocation2], %s1490_s11  ;;  %s875_s15 = sshll.u32 (!%p195_p9), %s1249_s22, 7 }
  0x10   : > { %s715_s16 = sshll.u32 (!%p195_p9), %s216_s12, 4  ;;  %s713_s25 = scalar_lea.hbm (!%p195_p9), %s1637_s3, %s875_s15  ;;  %s716_s16 = int_to_ptr.vmem [resolvable:$true] %s715_s16 }
  0x11   : > { %s694_s26 = scalar_lea.sflag (!%p195_p9), [#allocation3], %s214_s10  ;;  %s1197_s7 = smov (!%p195_p9), [#allocation2]  }
  0x12   : > { %s1136_s8 = sshll.u32 (!%p195_p9), %s1197_s7, 4  ;;  %s1137_s8 = int_to_ptr.vmem [resolvable:$false] %s1136_s8 }
  0x13   : > { %v1279_v0 = vld [vmem:[%s1635_s1 + $0x78] sm:$0xff]  ;;  %vm261_vm0 = vcmask 523264   ;;  %v1194_v1 = vmov 0.0   ;;  %vm1195_vm1 = vmmov 0   ;;  %v1291_v2 = vld [vmem:[%s1635_s1 + $0x70] sm:$0xff]  ;;  %v1303_v3 = vld [vmem:[%s1635_s1 + $0x68] sm:$0xff]  ;;  %v259_v21 = vlaneseq  ;;  %p1139_p0 = scmp.lt.s32.totalorder %s716_s16, %s1137_s8 }
  0x14   : > { %946 = vmatprep.subr.mxu0 %v1194_v1  ;;  %978 = vmatprep.mubr.msk.f32.mxu0 %vm1195_vm1, %v1194_v1  ;;  %v1311_v4 = vld [vmem:[%s1635_s1 + $0x60] sm:$0xff]  ;;  %v1320_v5 = vld [vmem:[%s1635_s1 + $0x58] sm:$0xff]  ;;  %v1328_v6 = vld [vmem:[%s1635_s1 + $0x50] sm:$0xff]  ;;  %s230_s30 = scalar_select %p229_p10, %s1249_s22, 1  ;;  %v1196_v40 = vmov 1.0  }
  0x15   : > { %947 = vmatpush3.xpose.msk.msra.mxu0 %vm261_vm0, %v1279_v0  ;;  %981 = vmatprep.subr.mxu1 %v1194_v1  ;;  %v1337_v7 = vld [vmem:[%s1635_s1 + $0x48] sm:$0xff]  ;;  %v1345_v8 = vld [vmem:[%s1635_s1 + $0x40] sm:$0xff]  ;;  %v1354_v9 = vld [vmem:[%s1635_s1 + $0x38] sm:$0xff]  ;;  %v1495_v22 = vand.u32 127, %v259_v21  ;;  %v1498_v31 = vshrl.u32 %v259_v21, 7 }
  0x16   : > { %948 = vmatprep.subr.mxu0 %v1194_v1  ;;  %982 = vmatpush3.msra.mxu1 %v1279_v0  ;;  %v1362_v10 = vld [vmem:[%s1635_s1 + $0x30] sm:$0xff]  ;;  %v1371_v11 = vld [vmem:[%s1635_s1 + $0x28] sm:$0xff]  ;;  %v1379_v12 = vld [vmem:[%s1635_s1 + $0x20] sm:$0xff]  ;;  %s1438_s6 = sshll.u32 %s230_s30, 3  ;;  %s1132_s30 = scalar_lea.vmem %s716_s16, 128 }
  0x17   : > { %983 = vmatprep.subr.mxu1 %v1194_v1  ;;  %1013 = vmatprep.mubr.msk.f32.mxu1 %vm1195_vm1, %v1194_v1  ;;  %v1388_v13 = vld [vmem:[%s1635_s1 + $0x18] sm:$0xff]  ;;  %v1396_v14 = vld [vmem:[%s1635_s1 + $0x10] sm:$0xff]  ;;  %v1405_v15 = vld [vmem:[%s1635_s1 + $0x8] sm:$0xff]  ;;  %s232_s9 = scalar_lea.vmem %s1634_s0, %s1438_s6  ;;  %v495_v32 = vsub.s32 1, %v1498_v31  ;;  %v488_v61 = vsub.s32 0, %v1498_v31  ;;  %p1133_p11 = scmp.ne.s32.totalorder %s716_s16, %s1132_s30 }
  0x18   : > { %984 = vmatpush3.msra.mxu1 %v1291_v2  ;;  %v1413_v16 = vld [vmem:[%s1635_s1] sm:$0xff] }
  0x19   : > { %949 = vmatpush3.xpose.msk.msra.mxu0 %vm261_vm0, %v1291_v2  ;;  %985 = vmatprep.subr.mxu1 %v1194_v1  ;;  %v1449_v17 = vld [vmem:[%s232_s9] sm:$0xff]  ;;  %p1134_p12 = pnand %p1133_p11, %p1266_p5  ;;  %s1138_s9 = scalar_lea.vmem %s1137_s8, 256 }
  0x1a   : > { %950 = vmatprep.subr.mxu0 %v1194_v1  ;;  %986 = vmatpush3.msra.mxu1 %v1303_v3  ;;  %v1504_v33 = vld [vmem:[%s1636_s2] sm:$0x3]  ;;  %p1140_p1 = scmp.lt.s32.totalorder %s1138_s9, %s1132_s30 }
  0x1b   : > { %987 = vmatprep.subr.mxu1 %v1194_v1  ;;  %v1507_v34 = vrot.slane %v1504_v33, %v495_v32  ;;  %p1135_p13 = pneg %p1134_p12 }
  0x1c   : > { %988 = vmatpush3.msra.mxu1 %v1311_v4  ;;  %p1141_p2 = por %p1140_p1, %p1139_p0 }
  0x1d   : > { %951 = vmatpush3.xpose.msk.msra.mxu0 %vm261_vm0, %v1303_v3  ;;  %989 = vmatprep.subr.mxu1 %v1194_v1 }
  0x1e   : > { %952 = vmatprep.subr.mxu0 %v1194_v1  ;;  %990 = vmatpush3.msra.mxu1 %v1320_v5  ;;  %p1142_p3 = pnand %p1141_p2, %p1135_p13 }
  0x1f   : > { %991 = vmatprep.subr.mxu1 %v1194_v1 }
  0x20   : > { %992 = vmatpush3.msra.mxu1 %v1328_v6 }
  0x21   : > { %953 = vmatpush3.xpose.msk.msra.mxu0 %vm261_vm0, %v1311_v4  ;;  %993 = vmatprep.subr.mxu1 %v1194_v1 }
  0x22   : > { %954 = vmatprep.subr.mxu0 %v1194_v1  ;;  %994 = vmatpush3.msra.mxu1 %v1337_v7 }
  0x23   : > { %995 = vmatprep.subr.mxu1 %v1194_v1 }
  0x24   : > { %996 = vmatpush3.msra.mxu1 %v1345_v8 }
  0x25   : > { %955 = vmatpush3.xpose.msk.msra.mxu0 %vm261_vm0, %v1320_v5  ;;  %997 = vmatprep.subr.mxu1 %v1194_v1 }
  0x26   : > { %956 = vmatprep.subr.mxu0 %v1194_v1  ;;  %998 = vmatpush3.msra.mxu1 %v1354_v9 }
  0x27   : > { %999 = vmatprep.subr.mxu1 %v1194_v1 }
  0x28   : > { %1000 = vmatpush3.msra.mxu1 %v1362_v10 }
  0x29   : > { %957 = vmatpush3.xpose.msk.msra.mxu0 %vm261_vm0, %v1328_v6  ;;  %1001 = vmatprep.subr.mxu1 %v1194_v1 }
  0x2a   : > { %958 = vmatprep.subr.mxu0 %v1194_v1  ;;  %1002 = vmatpush3.msra.mxu1 %v1371_v11 }
  0x2b   : > { %1003 = vmatprep.subr.mxu1 %v1194_v1 }
  0x2c   : > { %1004 = vmatpush3.msra.mxu1 %v1379_v12 }
  0x2d   : > { %959 = vmatpush3.xpose.msk.msra.mxu0 %vm261_vm0, %v1337_v7  ;;  %1005 = vmatprep.subr.mxu1 %v1194_v1 }
  0x2e   : > { %960 = vmatprep.subr.mxu0 %v1194_v1  ;;  %1006 = vmatpush3.msra.mxu1 %v1388_v13 }
  0x2f   : > { %1007 = vmatprep.subr.mxu1 %v1194_v1 }
  0x30   : > { %1008 = vmatpush3.msra.mxu1 %v1396_v14 }
  0x31   : > { %961 = vmatpush3.xpose.msk.msra.mxu0 %vm261_vm0, %v1345_v8  ;;  %1009 = vmatprep.subr.mxu1 %v1194_v1 }
  0x32   : > { %962 = vmatprep.subr.mxu0 %v1194_v1  ;;  %1010 = vmatpush3.msra.mxu1 %v1405_v15 }
  0x33   : > { %1011 = vmatprep.subr.mxu1 %v1194_v1 }
  0x34   : > { %1012 = vmatpush3.msra.mxu1 %v1413_v16 }
  0x35   : > { %963 = vmatpush3.xpose.msk.msra.mxu0 %vm261_vm0, %v1354_v9  ;;  %1016 = vmatprep.subr.mxu1 %v1194_v1 }
  0x36   : > { %964 = vmatprep.subr.mxu0 %v1194_v1 }
  0x39   : > { %965 = vmatpush3.xpose.msk.msra.mxu0 %vm261_vm0, %v1362_v10 }
  0x3a   : > { %966 = vmatprep.subr.mxu0 %v1194_v1 }
  0x3d   : > { %967 = vmatpush3.xpose.msk.msra.mxu0 %vm261_vm0, %v1371_v11 }
  0x3e   : > { %968 = vmatprep.subr.mxu0 %v1194_v1 }
  0x41   : > { %969 = vmatpush3.xpose.msk.msra.mxu0 %vm261_vm0, %v1379_v12 }
  0x42   : > { %970 = vmatprep.subr.mxu0 %v1194_v1 }
  0x45   : > { %971 = vmatpush3.xpose.msk.msra.mxu0 %vm261_vm0, %v1388_v13 }
  0x46   : > { %972 = vmatprep.subr.mxu0 %v1194_v1 }
  0x49   : > { %973 = vmatpush3.xpose.msk.msra.mxu0 %vm261_vm0, %v1396_v14 }
  0x4a   : > { %974 = vmatprep.subr.mxu0 %v1194_v1 }
  0x4d   : > { %975 = vmatpush3.xpose.msk.msra.mxu0 %vm261_vm0, %v1405_v15 }
  0x4e   : > { %976 = vmatprep.subr.mxu0 %v1194_v1 }
  0x51   : > { %977 = vmatpush3.xpose.msk.msra.mxu0 %vm261_vm0, %v1413_v16 }
  0x52   : > { %1051 = vmatprep.subr.mxu0 %v1194_v1 }
  0x54   : > { %979 = vmatmul.mubr.msk.f32.vlgmr.msra.gmra.mxu0 %vm261_vm0, %v1449_v17 }
  0x55   : > { %1052 = vmatpush3.msra.mxu0 %v1279_v0  ;;  %1083 = vmatprep.mubr.msk.f32.mxu0 %vm1195_vm1, %v1194_v1 }
  0x56   : > { %1053 = vmatprep.subr.mxu0 %v1194_v1 }
  0x57   : > { %1054 = vmatpush3.msra.mxu0 %v1291_v2 }
  0x58   : > { %1055 = vmatprep.subr.mxu0 %v1194_v1 }
  0x59   : > { %1056 = vmatpush3.msra.mxu0 %v1303_v3 }
  0x5a   : > { %1057 = vmatprep.subr.mxu0 %v1194_v1 }
  0x5b   : > { %1058 = vmatpush3.msra.mxu0 %v1311_v4 }
  0x5c   : > { %1059 = vmatprep.subr.mxu0 %v1194_v1 }
  0x5d   : > { %1060 = vmatpush3.msra.mxu0 %v1320_v5 }
  0x5e   : > { %1061 = vmatprep.subr.mxu0 %v1194_v1 }
  0x5f   : > { %1062 = vmatpush3.msra.mxu0 %v1328_v6 }
  0x60   : > { %1063 = vmatprep.subr.mxu0 %v1194_v1 }
  0x61   : > { %1064 = vmatpush3.msra.mxu0 %v1337_v7 }
  0x62   : > { %1065 = vmatprep.subr.mxu0 %v1194_v1 }
  0x63   : > { %1066 = vmatpush3.msra.mxu0 %v1345_v8 }
  0x64   : > { %1067 = vmatprep.subr.mxu0 %v1194_v1 }
  0x65   : > { %1068 = vmatpush3.msra.mxu0 %v1354_v9 }
  0x66   : > { %1069 = vmatprep.subr.mxu0 %v1194_v1 }
  0x67   : > { %1070 = vmatpush3.msra.mxu0 %v1362_v10 }
  0x68   : > { %1071 = vmatprep.subr.mxu0 %v1194_v1 }
  0x69   : > { %1072 = vmatpush3.msra.mxu0 %v1371_v11 }
  0x6a   : > { %1073 = vmatprep.subr.mxu0 %v1194_v1 }
  0x6b   : > { %1074 = vmatpush3.msra.mxu0 %v1379_v12 }
  0x6c   : > { %1075 = vmatprep.subr.mxu0 %v1194_v1 }
  0x6d   : > { %1076 = vmatpush3.msra.mxu0 %v1388_v13 }
  0x6e   : > { %1077 = vmatprep.subr.mxu0 %v1194_v1 }
  0x6f   : > { %1078 = vmatpush3.msra.mxu0 %v1396_v14 }
  0x70   : > { %1079 = vmatprep.subr.mxu0 %v1194_v1 }
  0x71   : > { %1080 = vmatpush3.msra.mxu0 %v1405_v15 }
  0x72   : > { %1081 = vmatprep.subr.mxu0 %v1194_v1 }
  0x73   : > { %1082 = vmatpush3.msra.mxu0 %v1413_v16 }
 0x114   : > { %v379_v18 = vpop.f32.mrf.mxu0 }
 0x115   : > { %v383_v19 = vmul.f32 0.03125, %v379_v18 }
 0x116   : > { %v980_v20 = vpop.f32.mrf.mxu0 }
 0x117   : > { %385 = vmax.xlane.f32.xlu0 %v383_v19  ;;  %384 = vst [vmem:[%s216_s12] sm:$0xff] %v383_v19 }
 0x1a0   : > { %v386_v23 = vpop.xlane.xlu0 %385 }
 0x1a1   : > { %vm387_vm2 = vcmp.ge.f32.partialorder %v383_v19, %v386_v23 }
 0x1a2   : > { %v388_v24 = vsel %vm387_vm2, %v1495_v22, 128 }
 0x1a3   : > { %v390_v25 = vshra.s32 %v388_v24, 16  ;;  %v389_v27 = vand.u32 65535, %v388_v24 }
 0x1a5   : > { %v392_v26 = vcvt.s32.f32 %v390_v25  ;;  %v391_v29 = vcvt.s32.f32 %v389_v27 }
 0x1a7   : > { %393 = vmin.xlane.f32.xlu0 %v392_v26 }
 0x230   : > { %v394_v28 = vpop.xlane.xlu0 %393 }
 0x231   : > { %vm395_vm3 = vcmp.eq.f32.partialorder %v392_v26, %v394_v28  ;;  %v400_v35 = vcvt.f32.s32 %v394_v28 }
 0x232   : > { %v396_v30 = vsel %vm395_vm3, %v391_v29, inf }
 0x233   : > { %397 = vmin.xlane.f32.xlu1 %v396_v30  ;;  %v401_v37 = vshll.u32 %v400_v35, 16 }
 0x2bc   : > { %v398_v36 = vpop.xlane.xlu1 %397 }
 0x2bd   : > { %v399_v38 = vcvt.f32.s32 %v398_v36 }
 0x2bf   : > { %v1509_v39 = vadd.s32 %v401_v37, %v399_v38 }
 0x2c1   : > { %vm403_vm4 = vcmp.eq.s32.totalorder %v1495_v22, %v1509_v39 }
 0x2c2   : > { %1014 = vmatmul.mubr.msk.f32.vlgmr.msra.gmra.mxu1 %vm403_vm4, %v1196_v40 }
 0x2c3   : > { %1017 = vmatpush3.xpose.msk.msra.mxu1 %vm261_vm0, %v1279_v0  ;;  %1048 = vmatprep.mubr.msk.f32.mxu1 %vm1195_vm1, %v1194_v1  ;;  %v489_v0 = vrot.slane %v1504_v33, %v488_v61 }
 0x2c4   : > { %1018 = vmatprep.subr.mxu1 %v1194_v1 }
 0x2c7   : > { %1019 = vmatpush3.xpose.msk.msra.mxu1 %vm261_vm0, %v1291_v2 }
 0x2c8   : > { %1020 = vmatprep.subr.mxu1 %v1194_v1 }
 0x2cb   : > { %1021 = vmatpush3.xpose.msk.msra.mxu1 %vm261_vm0, %v1303_v3  ;;  %v853_v3 = vsel %vm403_vm4, 1.0, %v1194_v1 }
 0x2cc   : > { %1022 = vmatprep.subr.mxu1 %v1194_v1 }
 0x2cf   : > { %1023 = vmatpush3.xpose.msk.msra.mxu1 %vm261_vm0, %v1311_v4  ;;  %v490_v4 = vmul.f32 %v853_v3, %v489_v0 }
 0x2d0   : > { %1024 = vmatprep.subr.mxu1 %v1194_v1 }
 0x2d3   : > { %1025 = vmatpush3.xpose.msk.msra.mxu1 %vm261_vm0, %v1320_v5 }
 0x2d4   : > { %1026 = vmatprep.subr.mxu1 %v1194_v1 }
 0x2d7   : > { %1027 = vmatpush3.xpose.msk.msra.mxu1 %vm261_vm0, %v1328_v6 }
 0x2d8   : > { %1028 = vmatprep.subr.mxu1 %v1194_v1 }
 0x2db   : > { %1029 = vmatpush3.xpose.msk.msra.mxu1 %vm261_vm0, %v1337_v7 }
 0x2dc   : > { %1030 = vmatprep.subr.mxu1 %v1194_v1 }
 0x2df   : > { %1031 = vmatpush3.xpose.msk.msra.mxu1 %vm261_vm0, %v1345_v8 }
 0x2e0   : > { %1032 = vmatprep.subr.mxu1 %v1194_v1 }
 0x2e3   : > { %1033 = vmatpush3.xpose.msk.msra.mxu1 %vm261_vm0, %v1354_v9 }
 0x2e4   : > { %1034 = vmatprep.subr.mxu1 %v1194_v1 }
 0x2e7   : > { %1035 = vmatpush3.xpose.msk.msra.mxu1 %vm261_vm0, %v1362_v10 }
 0x2e8   : > { %1036 = vmatprep.subr.mxu1 %v1194_v1 }
 0x2eb   : > { %1037 = vmatpush3.xpose.msk.msra.mxu1 %vm261_vm0, %v1371_v11 }
 0x2ec   : > { %1038 = vmatprep.subr.mxu1 %v1194_v1 }
 0x2ef   : > { %1039 = vmatpush3.xpose.msk.msra.mxu1 %vm261_vm0, %v1379_v12 }
 0x2f0   : > { %1040 = vmatprep.subr.mxu1 %v1194_v1 }
 0x2f3   : > { %1041 = vmatpush3.xpose.msk.msra.mxu1 %vm261_vm0, %v1388_v13 }
 0x2f4   : > { %1042 = vmatprep.subr.mxu1 %v1194_v1 }
 0x2f7   : > { %1043 = vmatpush3.xpose.msk.msra.mxu1 %vm261_vm0, %v1396_v14 }
 0x2f8   : > { %1044 = vmatprep.subr.mxu1 %v1194_v1 }
 0x2fb   : > { %1045 = vmatpush3.xpose.msk.msra.mxu1 %vm261_vm0, %v1405_v15 }
 0x2fc   : > { %1046 = vmatprep.subr.mxu1 %v1194_v1 }
 0x2ff   : > { %1047 = vmatpush3.xpose.msk.msra.mxu1 %vm261_vm0, %v1413_v16 }
 0x382   : > { %v472_v41 = vpop.f32.mrf.mxu1 }
 0x383   : > { %v480_v42 = vmul.f32 %v472_v41, %v472_v41  ;;  %v476_v43 = vmul.f32 %v472_v41, %v1449_v17 }
 0x384   : > { %v1015_v44 = vpop.f32.mrf.mxu1 }
 0x385   : > { %v481_v45 = vsel %vm261_vm0, %v480_v42, 0.0  ;;  %v477_v46 = vsel %vm261_vm0, %v476_v43, 0.0 }
 0x386   : > { %482 = vadd.xlane.f32.xlu1 %v481_v45  ;;  %478 = vadd.xlane.f32.xlu0 %v477_v46 }
 0x40f   : > { %v483_v47 = vpop.xlane.xlu1 %482  ;;  %v479_v49 = vpop.xlane.xlu0 %478 }
 0x410   : > { %1128 = vrcp.f32 %v483_v47 }
 0x41d   : > { %v1129_v48 = vpop.eup %1128 }
 0x41e   : > { %v1569_v50 = vmul.f32 %v1129_v48, %v479_v49 }
 0x420   : > { %v500_v51 = vmul.f32 %v1569_v50, %v472_v41 }
 0x422   : > { %v501_v52 = vsub.f32 %v1449_v17, %v500_v51 }
 0x424   : > { %1049 = vmatmul.mubr.msk.f32.vlgmr.msra.gmra.mxu1 %vm261_vm0, %v501_v52 }
 0x4e4   : > { %v571_v53 = vpop.f32.mrf.mxu1 }
 0x4e5   : > { %v575_v54 = vmul.f32 0.03125, %v571_v53 }
 0x4e6   : > { %v1050_v55 = vpop.f32.mrf.mxu1 }
 0x4e7   : > { %576 = vmax.xlane.f32.xlu1 %v575_v54 }
 0x570   : > { %v577_v56 = vpop.xlane.xlu1 %576 }
 0x571   : > { %vm578_vm5 = vcmp.ge.f32.partialorder %v575_v54, %v577_v56 }
 0x572   : > { %v579_v57 = vsel %vm578_vm5, %v1495_v22, 128 }
 0x573   : > { %v581_v58 = vshra.s32 %v579_v57, 16  ;;  %v580_v60 = vand.u32 65535, %v579_v57 }
 0x575   : > { %v583_v59 = vcvt.s32.f32 %v581_v58  ;;  %v582_v63 = vcvt.s32.f32 %v580_v60 }
 0x577   : > { %584 = vmin.xlane.f32.xlu0 %v583_v59 }
 0x600   : > { %v585_v62 = vpop.xlane.xlu0 %584 }
 0x601   : > { %vm586_vm6 = vcmp.eq.f32.partialorder %v583_v59, %v585_v62  ;;  %v591_v5 = vcvt.f32.s32 %v585_v62 }
 0x602   : > { %v587_v2 = vsel %vm586_vm6, %v582_v63, inf }
 0x603   : > { %588 = vmin.xlane.f32.xlu1 %v587_v2  ;;  %v592_v7 = vshll.u32 %v591_v5, 16 }
 0x607   : > { %491 = vadd.xlane.f32.xlu1 %v490_v4 }
 0x68c   : > { %v589_v6 = vpop.xlane.xlu1 %588 }
 0x68d   : > { %v590_v8 = vcvt.f32.s32 %v589_v6 }
 0x68f   : > { %v593_v9 = vadd.s32 %v592_v7, %v590_v8 }
 0x691   : > { %vm594_vm7 = vcmp.eq.s32.totalorder %v1495_v22, %v593_v9 }
 0x692   : > { %1084 = vmatmul.mubr.msk.f32.vlgmr.msra.gmra.mxu0 %vm594_vm7, %v1196_v40  ;;  %v872_v10 = vsel %vm594_vm7, 1.0, %v1194_v1  ;;  %v497_v1 = vmul.f32 %v853_v3, %v1507_v34 }
 0x693   : > { %v677_v11 = vmul.f32 %v872_v10, %v489_v0  ;;  %v680_v12 = vmul.f32 %v872_v10, %v1507_v34 }
 0x695   : > { %678 = vadd.xlane.f32.xlu1 %v677_v11 }
 0x699   : > { %681 = vadd.xlane.f32.xlu1 %v680_v12 }
 0x752   : > { %v663_v13 = vpop.f32.mrf.mxu0 }
 0x753   : > { %v671_v14 = vmul.f32 %v663_v13, %v663_v13  ;;  %v667_v16 = vmul.f32 %v663_v13, %v501_v52 }
 0x754   : > { %v1085_v15 = vpop.f32.mrf.mxu0 }
 0x755   : > { %v672_v17 = vsel %vm261_vm0, %v671_v14, 0.0  ;;  %v668_v18 = vsel %vm261_vm0, %v667_v16, 0.0 }
 0x756   : > { %673 = vadd.xlane.f32.xlu0 %v672_v17 }
 0x75a   : > { %669 = vadd.xlane.f32.xlu0 %v668_v18 }
 0x75e   : > { %498 = vadd.xlane.f32.xlu0 %v497_v1 }
 0x75f   : > { %1145 = shalt.err (!%p1142_p3)
}
 0x760   : > { %s1146_s22 = scalar_lea.hbm %s713_s25, 128  ;;  %s1150_s12 = scalar_lea.hbm %s1637_s3, 256 }
 0x761   : > { %p1147_p4 = scmp.ne.s32.totalorder %s713_s25, %s1146_s22  ;;  %p1151_p9 = scmp.lt.s32.totalorder %s713_s25, %s1637_s3 }
 0x762   : > { %p1152_p10 = scmp.lt.s32.totalorder %s1150_s12, %s1146_s22 }
 0x763   : > { %p1148_p7 = pnand %p1147_p4, %p1266_p5 }
 0x764   : > { %p1153_p11 = por %p1152_p10, %p1151_p9 }
 0x765   : > { %p1149_p8 = pneg %p1148_p7 }
 0x767   : > { %p1154_p12 = pnand %p1153_p11, %p1149_p8 }
 0x769   : > { %1157 = shalt.err (!%p1154_p12)
}
 0x76a   : > { %1086 = dma.vmem_to_hbm [thread:$0]  (%p1266_p5), %s716_s16, 128, %s713_s25, %s694_s26   ;;  %v492_v19 = vpop.xlane.xlu1 %491  ;;  %vm683_vm8 = vcmask 7168   ;;  %vm685_vm9 = vcmask 15360   ;;  %vm687_vm10 = vcmask 23552   ;;  %vm689_vm11 = vcmask 31744  }
 0x76b   : > { %s236_s23 = scalar_lea.vmem %s1638_s4, %s1438_s6  ;;  %s240_s25 = scalar_lea.vmem %s1639_s5, %s1438_s6 }
 0x76e   : > { %v679_v21 = vpop.xlane.xlu1 %678 }
 0x76f   : > { %v684_v23 = vsel %vm683_vm8, %v492_v19, %v679_v21 }
 0x772   : > { %v682_v25 = vpop.xlane.xlu1 %681 }
 0x7df   : > { %v674_v20 = vpop.xlane.xlu0 %673 }
 0x7e0   : > { %1130 = vrcp.f32 %v674_v20 }
 0x7e3   : > { %v670_v22 = vpop.xlane.xlu0 %669 }
 0x7e7   : > { %v499_v24 = vpop.xlane.xlu0 %498 }
 0x7e8   : > { %v686_v26 = vsel %vm685_vm9, %v684_v23, %v499_v24 }
 0x7e9   : > { %v688_v27 = vsel %vm687_vm10, %v686_v26, %v682_v25 }
 0x7ea   : > { %690 = vst.msk [vmem:[%s236_s23] sm:$0xff] %vm689_vm11, %v688_v27 }
 0x7ed   : > { %v1131_v28 = vpop.eup %1130 }
 0x7ee   : > { %v676_v29 = vmul.f32 %v1131_v28, %v670_v22 }
 0x7f0   : > { %v691_v30 = vsel %vm683_vm8, %v1569_v50, %v676_v29 }
 0x7f1   : > { %692 = vst.msk [vmem:[%s240_s25] sm:$0xff] %vm685_vm9, %v691_v30 }
 0x7f2 PF: > { %p1092_p5 = scmp.ge.s32.totalorder %s1192_s21, 2  ;;  %s733_s26 = sand.u32 1, %s1180_s18  }
 0x7f3   : > { %s734_s30 = scalar_lea.sflag [#allocation3], %s733_s26 }
 0x7f4   : > { %p1089_p13 = pnand %p1092_p5, %p1270_p6 }
 0x7f6   : > { %p1090_p0 = pneg %p1089_p13 }
 0x7f8   : > { %1175 = dma.done.wait (%p1090_p0), %s734_s30, 128  }
 0x7f9   : > { %1177 = vsyncadd (%p1090_p0), %s734_s30, 4294967168  ;;  %p16_p1 = scmp.ge.s32.totalorder %s1253_s24, 4   ;;  %s1642_s18 = smov %s1184_s19 }
 0x7fa   : > { %s1643_s19 = smov %s1188_s20  ;;  %s1644_s20 = smov %s1264_s27 }
 0x7fb   : > { %s1645_s21 = smov %s1253_s24  ;;  %18 = sbr.rel (!%p16_p1) target bundleno = 3 (0x3), region = 91 }
 0x800   :  { %753 = vsyncpa [#allocation3], 1 }
 0x801   :  { %755 = vsyncpa [#allocation3 + $0x1], 1 }

</bundles_post_ra>
